<compile_context>
chip_gen: v6e
topology: v6e:2x2x1
jax: 0.10.0
libtpu: 0.0.40
codegen_flags: <defaults>
</compile_context>

<pallas_src>
import functools
import math

import jax
import jax.numpy as jnp
from jax.experimental import pallas as pl
from jax.experimental.pallas import tpu as pltpu


# ---------------------------------------------------------------------------
# Kernels
# ---------------------------------------------------------------------------
def _rmsnorm_kernel(x_ref, w_ref, o_ref, *, eps, inv_h):
    x = x_ref[...].astype(jnp.float32)                       # input.float()
    # sum * (1/H_true): padded lanes are zero, so this equals mean over true H.
    ms = jnp.sum(x * x, axis=-1, keepdims=True) * inv_h
    y = x * jax.lax.rsqrt(ms + eps)                          # x * rsqrt(mean + eps)
    o_ref[...] = (w_ref[...].astype(jnp.float32) * y).astype(o_ref.dtype)


def _rmsnorm_bias_kernel(x_ref, w_ref, b_ref, o_ref, *, eps, inv_h):
    x = x_ref[...].astype(jnp.float32)
    ms = jnp.sum(x * x, axis=-1, keepdims=True) * inv_h
    y = x * jax.lax.rsqrt(ms + eps)
    out = w_ref[...].astype(jnp.float32) * y + b_ref[...].astype(jnp.float32)
    o_ref[...] = out.astype(o_ref.dtype)


# ---------------------------------------------------------------------------
# Tiling helpers
# ---------------------------------------------------------------------------
def _round_up(x, m):
    return ((x + m - 1) // m) * m


def _sublane(dtype):
    # 32-bit -> 8 rows / vreg, 16-bit -> 16, 8-bit -> 32.
    return 8 * (4 // jnp.dtype(dtype).itemsize)


def _vmem_budget_bytes():
    # Budget for the double-buffered (x tile + out tile). Leave plenty of slack
    # under the physical VMEM (64 MiB on v7x, 128 MiB on v5e/v6e).
    try:
        vmem_cap = int(pltpu.get_tpu_info().vmem_capacity_bytes)
    except Exception:
        vmem_cap = 64 * 1024 * 1024
    return min(vmem_cap // 4, 32 * 1024 * 1024), vmem_cap


def _choose_block_rows(rows, h_pad, in_itemsize, out_itemsize, row_align, budget):
    # Double-buffered input + output tiles.
    per_row = 2 * h_pad * (in_itemsize + out_itemsize)
    br = budget // max(per_row, 1)
    br = min(max(br, row_align), 1024)        # clamp; never below one sublane tile
    br = (br // row_align) * row_align
    br = max(br, row_align)
    br = min(br, _round_up(rows, row_align))  # no point tiling past the data
    return int(br)


# ---------------------------------------------------------------------------
# Wrapper
# ---------------------------------------------------------------------------
def distributed_rmsnorm_zero(x, weight, bias=None, *, eps=1e-5,
                             out_dtype=None, block_rows=None):
    """RMSNorm over the last dim of x with broadcast affine weight (and bias).

    x:      (..., H)
    weight: (H,)   (the all-gathered ZeRO weight buffer, conceptually [1,...,1,H])
    bias:   (H,) or None
    out_dtype: defaults to weight.dtype (== module's self.dtype).
    """
    orig_shape = x.shape
    H = orig_shape[-1]
    rows = math.prod(orig_shape[:-1]) if len(orig_shape) > 1 else 1
    if out_dtype is None:
        out_dtype = weight.dtype
    use_bias = bias is not None

    # --- lane padding: keep the last dim a multiple of 128 -----------------
    H_pad = max(_round_up(H, 128), 128)
    x2d = x.reshape(rows, H)
    w1d = weight.reshape(H)
    b1d = bias.reshape(H) if use_bias else None
    if H_pad != H:
        x2d = jnp.pad(x2d, ((0, 0), (0, H_pad - H)))
        w1d = jnp.pad(w1d, (0, H_pad - H))
        if use_bias:
            b1d = jnp.pad(b1d, (0, H_pad - H))
    w2d = w1d.reshape(1, H_pad)
    b2d = b1d.reshape(1, H_pad) if use_bias else None

    # --- row tiling: VMEM-budgeted block_rows ------------------------------
    row_align = max(_sublane(x.dtype), _sublane(out_dtype))
    budget, vmem_cap = _vmem_budget_bytes()
    if block_rows is None:
        block_rows = _choose_block_rows(
            rows, H_pad,
            jnp.dtype(x.dtype).itemsize, jnp.dtype(out_dtype).itemsize,
            row_align, budget)
    block_rows = max(row_align, (int(block_rows) // row_align) * row_align)

    rows_pad = _round_up(rows, block_rows)
    if rows_pad != rows:
        x2d = jnp.pad(x2d, ((0, rows_pad - rows), (0, 0)))
    grid = (pl.cdiv(rows_pad, block_rows),)

    # --- build specs / args (no dummy bias when bias is None) --------------
    x_spec = pl.BlockSpec((block_rows, H_pad), lambda i: (i, 0))
    w_spec = pl.BlockSpec((1, H_pad), lambda i: (0, 0))
    in_specs = [x_spec, w_spec]
    args = [x2d, w2d]
    if use_bias:
        in_specs.append(pl.BlockSpec((1, H_pad), lambda i: (0, 0)))
        args.append(b2d)
        kernel = functools.partial(_rmsnorm_bias_kernel, eps=eps, inv_h=1.0 / H)
    else:
        kernel = functools.partial(_rmsnorm_kernel, eps=eps, inv_h=1.0 / H)

    # Scoped VMEM limit: enough for the double-buffered tiles + headroom,
    # never above half the physical VMEM of this generation.
    tile_bytes = 2 * block_rows * H_pad * (
        jnp.dtype(x.dtype).itemsize + jnp.dtype(out_dtype).itemsize)
    vmem_limit = int(min(vmem_cap // 2, max(tile_bytes + (4 << 20), 16 << 20)))

    out2d = pl.pallas_call(
        kernel,
        out_shape=jax.ShapeDtypeStruct((rows_pad, H_pad), out_dtype),
        grid_spec=pltpu.PrefetchScalarGridSpec(
            num_scalar_prefetch=0,
            grid=grid,
            in_specs=in_specs,
            out_specs=pl.BlockSpec((block_rows, H_pad), lambda i: (i, 0)),
        ),
        compiler_params=pltpu.CompilerParams(
            dimension_semantics=("parallel",),
            vmem_limit_bytes=vmem_limit),
    )(*args)

    out = out2d[:rows, :H].reshape(orig_shape)
    return out


# ---------------------------------------------------------------------------
# Reference + test
# ---------------------------------------------------------------------------
def _reference(x, weight, bias=None, eps=1e-5, out_dtype=None):
    if out_dtype is None:
        out_dtype = weight.dtype
    x32 = x.astype(jnp.float32)
    mean = jnp.mean(x32 * x32, axis=-1, keepdims=True)
    y = x32 * jax.lax.rsqrt(mean + eps)
    out = weight.astype(jnp.float32) * y
    if bias is not None:
        out = out + bias.astype(jnp.float32)
    return out.astype(out_dtype)


if __name__ == "__main__":
    # Small shapes consistent with the module: normalized_shape = (hidden,)
    batch, seq, hidden = 2, 8, 32
    key = jax.random.PRNGKey(0)
    kx, kb = jax.random.split(key)
    x = jax.random.normal(kx, (batch, seq, hidden), dtype=jnp.float32)

    # Deterministic parameter init matching reset_parameters():
    # weight = ones(normalized_shape); bias = zeros (only used when bias=True).
    weight = jnp.ones((hidden,), dtype=jnp.float32)
    bias = jnp.zeros((hidden,), dtype=jnp.float32)
    # perturb bias a bit so the bias path is actually exercised
    bias = bias + 0.1 * jax.random.normal(kb, (hidden,), dtype=jnp.float32)

    # Default config: elementwise_affine=True, bias=False, dtype=float32.
    out = distributed_rmsnorm_zero(x, weight, bias=None, eps=1e-5)
    out = jax.block_until_ready(out)
    ref = _reference(x, weight, bias=None, eps=1e-5)
    assert out.shape == x.shape and out.dtype == jnp.float32
    assert jnp.allclose(out, ref, atol=1e-5, rtol=1e-5), "mismatch (no bias)"

    # bias=True path.
    out_b = distributed_rmsnorm_zero(x, weight, bias=bias, eps=1e-5)
    out_b = jax.block_until_ready(out_b)
    ref_b = _reference(x, weight, bias=bias, eps=1e-5)
    assert jnp.allclose(out_b, ref_b, atol=1e-5, rtol=1e-5), "mismatch (bias)"

    # TODO(synk): AllGather/ReduceScatter of sharded weights (ZeRO buffer
    # collection) is a multi-device collective; here P_x.size == 1 so the
    # gathered weight_buffer is just the full weight.
    print("KERNEL_OK")
</pallas_src>

<mosaic_0001>
module attributes {stable_mosaic.version = 11 : i64} {
  func.func @_rmsnorm_kernel(%arg0: i32, %arg1: memref<16x128xf32, #tpu.memory_space<vmem>>, %arg2: memref<1x128xf32, #tpu.memory_space<vmem>>, %arg3: memref<16x128xf32, #tpu.memory_space<vmem>>) attributes {dimension_semantics = [#tpu.dimension_semantics<parallel>], iteration_bounds = array<i64: 1>, scalar_prefetch = 0 : i64, scratch_operands = 0 : i64, tpu.core_type = #tpu.core_type<tc>, window_params = [{transform_indices = @transform_0, window_bounds = array<i64: 16, 128>}, {pipeline_mode = #tpu.pipeline_mode<synchronous>, transform_indices = @transform_1, window_bounds = array<i64: 1, 128>}, {transform_indices = @transform_2, window_bounds = array<i64: 16, 128>}]} {
    %c0 = arith.constant 0 : index
    %c0_0 = arith.constant 0 : index
    %0 = vector.load %arg1[%c0, %c0_0] : memref<16x128xf32, #tpu.memory_space<vmem>>, vector<16x128xf32>
    %1 = arith.mulf %0, %0 : vector<16x128xf32>
    %cst = arith.constant dense<0.000000e+00> : vector<16xf32>
    %2 = vector.multi_reduction <add>, %1, %cst [1] : vector<16x128xf32> to vector<16xf32>
    %3 = vector.shape_cast %2 : vector<16xf32> to vector<16x1xf32>
    %cst_1 = arith.constant 3.125000e-02 : f32
    %4 = vector.broadcast %cst_1 : f32 to vector<16x1xf32>
    %5 = arith.mulf %3, %4 : vector<16x1xf32>
    %cst_2 = arith.constant 9.99999974E-6 : f32
    %6 = vector.broadcast %cst_2 : f32 to vector<16x1xf32>
    %7 = arith.addf %5, %6 : vector<16x1xf32>
    %8 = math.rsqrt %7 : vector<16x1xf32>
    %9 = vector.broadcast %8 : vector<16x1xf32> to vector<16x128xf32>
    %10 = arith.mulf %0, %9 : vector<16x128xf32>
    %c0_3 = arith.constant 0 : index
    %c0_4 = arith.constant 0 : index
    %11 = vector.load %arg2[%c0_3, %c0_4] : memref<1x128xf32, #tpu.memory_space<vmem>>, vector<1x128xf32>
    %12 = vector.broadcast %11 : vector<1x128xf32> to vector<16x128xf32>
    %13 = arith.mulf %12, %10 : vector<16x128xf32>
    %c0_5 = arith.constant 0 : index
    %c0_6 = arith.constant 0 : index
    %14 = vector.load %arg3[%c0_5, %c0_6] : memref<16x128xf32, #tpu.memory_space<vmem>>, vector<16x128xf32>
    tpu.vector_store %arg3[%c0_5, %c0_6], %13 {strides = array<i32>} : memref<16x128xf32, #tpu.memory_space<vmem>>, vector<16x128xf32>,
    return
  }
  func.func @transform_0(%arg0: i32) -> (i32, i32) {
    %c0_i32 = arith.constant 0 : i32
    %c0_i32_0 = arith.constant 0 : i32
    return %arg0, %c0_i32 : i32, i32
  }
  func.func @transform_1(%arg0: i32) -> (i32, i32) {
    %c0_i32 = arith.constant 0 : i32
    %c0_i32_0 = arith.constant 0 : i32
    %c0_i32_1 = arith.constant 0 : i32
    return %c0_i32, %c0_i32_0 : i32, i32
  }
  func.func @transform_2(%arg0: i32) -> (i32, i32) {
    %c0_i32 = arith.constant 0 : i32
    %c0_i32_0 = arith.constant 0 : i32
    return %arg0, %c0_i32 : i32, i32
  }
}

</mosaic_0001>

<bundles_post_ra>
// kernel: tpu_custom_call.1
= control target key start
LH: loop header
LB: loop body
LE: loop exit
PB: predicated region body
PF: predicated region fallthrough
CT: control target
= control target key end

     0   :  { %7 = vsyncpa [#allocation3], 0  ;;  %s157_s0 = inlined_call_operand.hbm [shape: f32[16,128], index: 0, kind: input, shape index: {}]   ;;  %s158_s1 = inlined_call_operand.vmem [shape: f32[1,128], index: 1, kind: input, shape index: {}]   ;;  %s159_s2 = inlined_call_operand.hbm [shape: f32[16,128], index: 2, kind: output, shape index: {}]  }
   0x1   :  { %8 = vsyncpa [#allocation4], 0  ;;  %s123_s9 = smov [#allocation2]  }
   0x2   :  { %s14_s10 = sshll.u32 %s123_s9, 4  ;;  %s15_s10 = int_to_ptr.vmem [resolvable:$true] %s14_s10 }
   0x3   :  { %s87_s11 = scalar_lea.vmem %s15_s10, 256  ;;  %p92_p1 = scmp.lt.s32.totalorder %s15_s10, %s15_s10 }
   0x4   :  { %p88_p0 = scmp.ne.s32.totalorder %s15_s10, %s87_s11  ;;  %p93_p2 = scmp.lt.s32.totalorder %s87_s11, %s87_s11 }
   0x6   :  { %p94_p3 = por %p93_p2, %p92_p1 }
   0x8   :  { %p95_p4 = pnand %p94_p3, %p88_p0 }
   0xa   :  { %98 = shalt.err (!%p95_p4)
}
   0xb   :  { %s124_s12 = smov 128   ;;  %s125_s13 = smov 8  }
   0xc   :  { %20 = dma.hbm_to_vmem [thread:$0]  %s157_s0, 256, %s15_s10, [#allocation3], %s124_s12, %s124_s12, %s125_s13  }
   0xd   :  { %119 = dma.done.wait [#allocation3], 256  }
   0xe   :  { %120 = vsyncadd [#allocation3], 4294967040  ;;  %v26_v0 = vld [vmem:[#allocation2] sm:$0xff]  ;;  %v27_v1 = vld [vmem:[#allocation2 + $0x8] sm:$0xff]  ;;  %s126_s0 = smov [#allocation5]  }
   0xf   :  { %v28_v2 = vmul.f32 %v26_v0, %v26_v0  ;;  %v29_v3 = vmul.f32 %v27_v1, %v27_v1  ;;  %v70_v11 = vld [vmem:[%s158_s1] ss:$0 sm:$0xff]  ;;  %s58_s18 = sshll.u32 %s126_s0, 4  ;;  %s59_s18 = int_to_ptr.vmem [resolvable:$true] %s58_s18 }
  0x10   :  { %s99_s19 = scalar_lea.vmem %s59_s18, 256  ;;  %p104_p6 = scmp.lt.s32.totalorder %s59_s18, %s59_s18 }
  0x11   :  { %30 = vadd.xlane.f32.xlu0 %v28_v2  ;;  %p100_p5 = scmp.ne.s32.totalorder %s59_s18, %s99_s19  ;;  %p105_p7 = scmp.lt.s32.totalorder %s99_s19, %s99_s19 }
  0x13   :  { %p106_p8 = por %p105_p7, %p104_p6 }
  0x15   :  { %32 = vadd.xlane.f32.xlu0 %v29_v3  ;;  %p107_p9 = pnand %p106_p8, %p100_p5 }
  0x9a   :  { %v31_v4 = vpop.xlane.xlu0 %30 }
  0x9b   :  { %v34_v5 = vmul.f32 0.03125, %v31_v4 }
  0x9d   :  { %v36_v6 = vadd.f32 1e-05, %v34_v5 }
  0x9e   :  { %v33_v7 = vpop.xlane.xlu0 %32 }
  0x9f   :  { %75 = vrsqrt.f32 %v36_v6  ;;  %v35_v8 = vmul.f32 0.03125, %v33_v7 }
  0xa1   :  { %v37_v9 = vadd.f32 1e-05, %v35_v8 }
  0xa3   :  { %77 = vrsqrt.f32 %v37_v9 }
  0xac   :  { %v76_v10 = vpop.eup %75 }
  0xad   :  { %v40_v12 = vmul.f32 %v76_v10, %v26_v0 }
  0xaf   :  { %v49_v13 = vmul.f32 %v70_v11, %v40_v12 }
  0xb0   :  { %v78_v14 = vpop.eup %77 }
  0xb1   :  { %v41_v15 = vmul.f32 %v78_v14, %v27_v1  ;;  %51 = vst [vmem:[#allocation5] sm:$0xff] %v49_v13 }
  0xb3   :  { %v50_v16 = vmul.f32 %v70_v11, %v41_v15 }
  0xb5   :  { %52 = vst [vmem:[#allocation5 + $0x8] sm:$0xff] %v50_v16 }
  0xb6   :  { %110 = shalt.err (!%p107_p9)
}
  0xb7   :  { %64 = dma.vmem_to_hbm [thread:$0]  %s59_s18, 256, %s159_s2, [#allocation4], %s124_s12, %s124_s12, %s125_s13  }
  0xb8   :  { %121 = dma.done.wait [#allocation4], 256  }
  0xb9   :  { %122 = vsyncadd [#allocation4], 4294967040 }
  0xba   :  { %68 = vsyncpa [#allocation3], 1 }
  0xbb   :  { %69 = vsyncpa [#allocation4], 1 }

</bundles_post_ra>
